<compile_context>
chip_gen: v5e
topology: v5e:2x2
jax: 0.10.0
libtpu: 0.0.40
codegen_flags: <defaults>
</compile_context>

<pallas_src>
import jax
import jax.numpy as jnp
from jax.experimental import pallas as pl
from jax.experimental.pallas import tpu as pltpu

HIDDEN = 768  # hardcoded in the PyTorch module (hidden_size = 768)


# ---------------------------------------------------------------------------
# Pallas kernel: fused UIE head
# ---------------------------------------------------------------------------
def uie_head_kernel(x_ref, w_ref, b_ref, o_ref):
    # x_ref: (TILE_M, H) bf16   rows of encoder output (flattened (B*S, H))
    # w_ref: (2, H)      bf16   stacked [w_start; w_end]
    # b_ref: (2, 1)      f32    stacked [b_start; b_end]
    # o_ref: (2, TILE_M) f32    stacked [start_prob; end_prob], lane-dense
    logits = jnp.einsum("kh,mh->km", w_ref[...], x_ref[...],
                        preferred_element_type=jnp.float32)    # (2, TILE_M) MXU
    logits = logits + b_ref[...]                               # (2,1) broadcast
    o_ref[...] = 1.0 / (1.0 + jnp.exp(-logits))                # sigmoid (EUP exp)


def uie_head(sequence_output, w_stacked, b_stacked, *, tile_m=512):
    """sequence_output: (B, S, H) -> (start_prob (B, S), end_prob (B, S))."""
    B, S, H = sequence_output.shape
    M = B * S

    # Flatten rows, cast to bf16 (bandwidth-bound kernel; f32 accumulation).
    x = sequence_output.reshape(M, H).astype(jnp.bfloat16)
    w = w_stacked.astype(jnp.bfloat16)                 # (2, H)
    b = b_stacked.reshape(2, 1).astype(jnp.float32)    # (2, 1)

    # Row tile: multiple of 128 (lane-dense output) and of 16 (bf16 sublanes);
    # don't over-pad tiny inputs.
    tile_m = min(tile_m, pl.cdiv(M, 128) * 128)
    m_pad = pl.cdiv(M, tile_m) * tile_m
    if m_pad != M:
        x = jnp.pad(x, ((0, m_pad - M), (0, 0)))

    out = pl.pallas_call(
        uie_head_kernel,
        out_shape=jax.ShapeDtypeStruct((2, m_pad), jnp.float32),
        grid_spec=pltpu.PrefetchScalarGridSpec(
            num_scalar_prefetch=0,
            grid=(m_pad // tile_m,),
            in_specs=[
                pl.BlockSpec((tile_m, H), lambda i: (i, 0)),
                pl.BlockSpec((2, H), lambda i: (0, 0)),
                pl.BlockSpec((2, 1), lambda i: (0, 0)),
            ],
            out_specs=pl.BlockSpec((2, tile_m), lambda i: (0, i)),
        ),
        compiler_params=pltpu.CompilerParams(
            dimension_semantics=("parallel",),
            vmem_limit_bytes=32 * 1024 * 1024),
    )(x, w, b)

    # Major-axis split + contiguous reshape: zero-cost.
    start_prob = out[0, :M].reshape(B, S)
    end_prob = out[1, :M].reshape(B, S)
    return start_prob, end_prob


# ---------------------------------------------------------------------------
# Minimal deterministic encoder stand-in (the PyTorch module takes a pretrained
# transformers ERNIE 3.0 backbone by reference; we synthesize a tiny
# embedding-sum + LayerNorm encoder so the head has realistic (B, S, 768)
# inputs). Gather/embedding lookup stays in plain JAX (glue).
# ---------------------------------------------------------------------------
# TODO(synk): full pretrained ERNIE 3.0 transformer backbone is not
# reproducible in-script; this embedding-sum + LayerNorm is a stand-in.
def tiny_encoder(params, input_ids, token_type_ids, pos_ids):
    emb = (params["word_emb"][input_ids]
           + params["type_emb"][token_type_ids]
           + params["pos_emb"][pos_ids])
    mu = emb.mean(-1, keepdims=True)
    var = ((emb - mu) ** 2).mean(-1, keepdims=True)
    return (emb - mu) * jax.lax.rsqrt(var + 1e-12)


def uie_forward(params, input_ids, token_type_ids, attention_mask=None,
                pos_ids=None):
    # attention_mask accepted for API parity; unused by the stand-in encoder.
    B, S = input_ids.shape
    if pos_ids is None:
        pos_ids = jnp.broadcast_to(jnp.arange(S, dtype=jnp.int32), (B, S))
    sequence_output = tiny_encoder(params, input_ids, token_type_ids, pos_ids)
    sequence_output = sequence_output.astype(jnp.float32)
    return uie_head(sequence_output, params["w_heads"], params["b_heads"])


# ---------------------------------------------------------------------------
# Deterministic parameter init (shapes implied by the module's __init__)
# ---------------------------------------------------------------------------
def init_params(key, vocab_size=128, max_pos=128, hidden=HIDDEN):
    k = jax.random.split(key, 5)
    word_emb = 0.02 * jax.random.normal(k[0], (vocab_size, hidden), jnp.float32)
    type_emb = 0.02 * jax.random.normal(k[1], (2, hidden), jnp.float32)
    pos_emb = 0.02 * jax.random.normal(k[2], (max_pos, hidden), jnp.float32)
    # nn.Linear(768, 1) x2 -> stacked as rows of a (2, hidden) weight + (2,) bias
    w_start = 0.02 * jax.random.normal(k[3], (hidden,), jnp.float32)
    w_end = 0.02 * jax.random.normal(k[4], (hidden,), jnp.float32)
    w_heads = jnp.stack([w_start, w_end], axis=0)            # (2, 768)
    b_heads = jnp.zeros((2,), jnp.float32)
    return {"word_emb": word_emb, "type_emb": type_emb, "pos_emb": pos_emb,
            "w_heads": w_heads, "b_heads": b_heads}


if __name__ == "__main__":
    key = jax.random.PRNGKey(0)
    kp, ki, kt = jax.random.split(key, 3)

    B, S, VOCAB = 2, 128, 128
    params = init_params(kp, vocab_size=VOCAB, max_pos=S)

    input_ids = jax.random.randint(ki, (B, S), 0, VOCAB, dtype=jnp.int32)
    token_type_ids = jax.random.randint(kt, (B, S), 0, 2, dtype=jnp.int32)
    attention_mask = jnp.ones((B, S), jnp.int32)

    start_prob, end_prob = uie_forward(params, input_ids, token_type_ids,
                                       attention_mask=attention_mask)
    jax.block_until_ready((start_prob, end_prob))

    # Pure-JAX f32 reference for the Pallas head (kernel runs bf16 inputs with
    # f32 accumulation -> loosened tolerance).
    seq = tiny_encoder(params, input_ids, token_type_ids,
                       jnp.broadcast_to(jnp.arange(S, dtype=jnp.int32), (B, S)))
    logits = jnp.einsum("bsh,kh->bsk", seq, params["w_heads"]) + params["b_heads"]
    ref = jax.nn.sigmoid(logits)

    assert start_prob.shape == (B, S) and end_prob.shape == (B, S)
    assert jnp.allclose(start_prob, ref[..., 0], atol=1e-2)
    assert jnp.allclose(end_prob, ref[..., 1], atol=1e-2)

    print("KERNEL_OK")
</pallas_src>

<mosaic_0001>
module attributes {stable_mosaic.version = 11 : i64} {
  func.func @uie_head_kernel(%arg0: i32, %arg1: memref<256x768xbf16, #tpu.memory_space<vmem>>, %arg2: memref<2x768xbf16, #tpu.memory_space<vmem>>, %arg3: memref<2x1xf32, #tpu.memory_space<vmem>>, %arg4: memref<2x256xf32, #tpu.memory_space<vmem>>) attributes {dimension_semantics = [#tpu.dimension_semantics<parallel>], iteration_bounds = array<i64: 1>, scalar_prefetch = 0 : i64, scratch_operands = 0 : i64, tpu.core_type = #tpu.core_type<tc>, window_params = [{transform_indices = @transform_0, window_bounds = array<i64: 256, 768>}, {pipeline_mode = #tpu.pipeline_mode<synchronous>, transform_indices = @transform_1, window_bounds = array<i64: 2, 768>}, {pipeline_mode = #tpu.pipeline_mode<synchronous>, transform_indices = @transform_2, window_bounds = array<i64: 2, 1>}, {transform_indices = @transform_3, window_bounds = array<i64: 2, 256>}]} {
    %c0 = arith.constant 0 : index
    %c0_0 = arith.constant 0 : index
    %0 = vector.load %arg2[%c0, %c0_0] : memref<2x768xbf16, #tpu.memory_space<vmem>>, vector<2x768xbf16>
    %c0_1 = arith.constant 0 : index
    %c0_2 = arith.constant 0 : index
    %1 = vector.load %arg1[%c0_1, %c0_2] : memref<256x768xbf16, #tpu.memory_space<vmem>>, vector<256x768xbf16>
    "tpu.trace_start"() <{level = 10 : i32, message = "kh,mh->km"}> : () -> ()
    %cst = arith.constant dense<0.000000e+00> : vector<2x256xf32>
    %2 = tpu.matmul %0, %1, %cst {dimension_numbers = #tpu.dot_dimension_numbers<[1], [1], [0], [0], [0, 0, 1, 0], [], []>} : vector<2x768xbf16>, vector<256x768xbf16>, vector<2x256xf32> -> vector<2x256xf32>
    "tpu.trace_stop"() : () -> ()
    %c0_3 = arith.constant 0 : index
    %c0_4 = arith.constant 0 : index
    %3 = vector.load %arg3[%c0_3, %c0_4] : memref<2x1xf32, #tpu.memory_space<vmem>>, vector<2x1xf32>
    %4 = vector.broadcast %3 : vector<2x1xf32> to vector<2x256xf32>
    %5 = arith.addf %2, %4 : vector<2x256xf32>
    %cst_5 = arith.constant 0.000000e+00 : f32
    %6 = vector.broadcast %cst_5 : f32 to vector<2x256xf32>
    %7 = arith.subf %6, %5 : vector<2x256xf32>
    %8 = math.exp %7 : vector<2x256xf32>
    %cst_6 = arith.constant 1.000000e+00 : f32
    %9 = vector.broadcast %cst_6 : f32 to vector<2x256xf32>
    %10 = arith.addf %9, %8 : vector<2x256xf32>
    %cst_7 = arith.constant 1.000000e+00 : f32
    %11 = vector.broadcast %cst_7 : f32 to vector<2x256xf32>
    %12 = arith.divf %11, %10 : vector<2x256xf32>
    %c0_8 = arith.constant 0 : index
    %c0_9 = arith.constant 0 : index
    %13 = vector.load %arg4[%c0_8, %c0_9] : memref<2x256xf32, #tpu.memory_space<vmem>>, vector<2x256xf32>
    tpu.vector_store %arg4[%c0_8, %c0_9], %12 {strides = array<i32>} : memref<2x256xf32, #tpu.memory_space<vmem>>, vector<2x256xf32>,
    return
  }
  func.func @transform_0(%arg0: i32) -> (i32, i32) {
    %c0_i32 = arith.constant 0 : i32
    %c0_i32_0 = arith.constant 0 : i32
    return %arg0, %c0_i32 : i32, i32
  }
  func.func @transform_1(%arg0: i32) -> (i32, i32) {
    %c0_i32 = arith.constant 0 : i32
    %c0_i32_0 = arith.constant 0 : i32
    %c0_i32_1 = arith.constant 0 : i32
    return %c0_i32, %c0_i32_0 : i32, i32
  }
  func.func @transform_2(%arg0: i32) -> (i32, i32) {
    %c0_i32 = arith.constant 0 : i32
    %c0_i32_0 = arith.constant 0 : i32
    %c0_i32_1 = arith.constant 0 : i32
    return %c0_i32, %c0_i32_0 : i32, i32
  }
  func.func @transform_3(%arg0: i32) -> (i32, i32) {
    %c0_i32 = arith.constant 0 : i32
    %c0_i32_0 = arith.constant 0 : i32
    return %c0_i32, %arg0 : i32, i32
  }
}

</mosaic_0001>

<bundles_post_ra>
// kernel: tpu_custom_call.1
= control target key start
LH: loop header
LB: loop body
LE: loop exit
PB: predicated region body
PF: predicated region fallthrough
CT: control target
= control target key end

     0   :  { %8 = vsyncpa [#allocation3], 0  ;;  %s1502_s0 = inlined_call_operand.hbm [shape: bf16[256,768], index: 0, kind: input, shape index: {}]   ;;  %s1503_s1 = inlined_call_operand.hbm [shape: bf16[2,768], index: 1, kind: input, shape index: {}]   ;;  %s1504_s2 = inlined_call_operand.vmem [shape: f32[2,1], index: 2, kind: input, shape index: {}]   ;;  %s1505_s3 = inlined_call_operand.hbm [shape: f32[2,256], index: 3, kind: output, shape index: {}]  }
   0x1   :  { %9 = vsyncpa [#allocation6], 0 }
   0x2   :  { %10 = vsyncpa [#allocation4], 0  ;;  %s15_s14 = sshll.u32 %s1502_s0, 4  ;;  %s1434_s15 = smov [#allocation2]   ;;  %s16_s14 = int_to_ptr.hbm [resolvable:$true] %s15_s14 }
   0x3   :  { %s17_s16 = sshll.u32 %s1434_s15, 4  ;;  %s29_s19 = sshll.u32 %s1503_s1, 4  ;;  %s18_s16 = int_to_ptr.vmem [resolvable:$true] %s17_s16  ;;  %s30_s19 = int_to_ptr.hbm [resolvable:$true] %s29_s19 }
   0x4   :  { %s1435_s20 = smov 384   ;;  %s1436_s21 = smov 24  }
   0x5   :  { %23 = dma.hbm_to_vmem [thread:$0]  %s16_s14, 12288, %s18_s16, [#allocation3], %s1435_s20, %s1435_s20, %s1436_s21  }
   0x6   :  { %s1437_s22 = smov [#allocation5]  }
   0x7   :  { %s31_s23 = sshll.u32 %s1437_s22, 4  ;;  %s32_s23 = int_to_ptr.vmem [resolvable:$true] %s31_s23 }
   0x8   :  { %34 = dma.hbm_to_vmem [thread:$0]  %s30_s19, 96, %s32_s23, [#allocation6]  }
   0x9   :  { %1428 = dma.done.wait [#allocation3], 12288  }
   0xa   :  { %1429 = vsyncadd [#allocation3], 4294955008 }
   0xb   :  { %1430 = dma.done.wait [#allocation6], 96  }
   0xc   :  { %1431 = vsyncadd [#allocation6], 4294967200  ;;  %v1031_v0 = vld [vmem:[#allocation2 + $0x150] sm:$0xf]  ;;  %v1290_v1 = vld [vmem:[#allocation2 + $0x164] sm:$0xf0] }
   0xd   :  { %v1287_v2 = vld [vmem:[#allocation2 + $0x154] sm:$0xf]  ;;  %v1032_v3 = vor.u32 %v1290_v1, %v1031_v0  ;;  %v1033_v4 = vld [vmem:[#allocation2 + $0x168] sm:$0xf0]  ;;  %v1039_v5 = vld [vmem:[#allocation2 + $0x158] sm:$0xf] }
   0xe   :  { %v1291_v6 = vld [vmem:[#allocation2 + $0x16c] sm:$0xf0]  ;;  %v1036_v7 = vor.u32 %v1287_v2, %v1033_v4  ;;  %v1288_v9 = vld [vmem:[#allocation2 + $0x15c] sm:$0xf]  ;;  %v1041_v10 = vld [vmem:[#allocation2 + $0x170] sm:$0xf0] }
   0xf   :  { %v1040_v8 = vor.u32 %v1291_v6, %v1039_v5  ;;  %642 = vmatpush.bf16.xpose.msra.mxu0 %v1032_v3  ;;  %v1044_v11 = vor.u32 %v1288_v9, %v1041_v10  ;;  %v1007_v12 = vld [vmem:[#allocation2 + $0x120] sm:$0xf]  ;;  %v1284_v13 = vld [vmem:[#allocation2 + $0x134] sm:$0xf0]  ;;  %v1281_v14 = vld [vmem:[#allocation2 + $0x124] sm:$0xf] }
  0x10   :  { %655 = vmatpush.bf16.xpose.msra.mxu1 %v1036_v7  ;;  %v1009_v15 = vld [vmem:[#allocation2 + $0x138] sm:$0xf0]  ;;  %v1015_v16 = vld [vmem:[#allocation2 + $0x128] sm:$0xf]  ;;  %v1285_v17 = vld [vmem:[#allocation2 + $0x13c] sm:$0xf0]  ;;  %v1008_v20 = vor.u32 %v1284_v13, %v1007_v12 }
  0x11   :  { %668 = vmatpush.bf16.xpose.msra.mxu2 %v1040_v8  ;;  %681 = vmatpush.bf16.xpose.msra.mxu3 %v1044_v11  ;;  %v1282_v18 = vld [vmem:[#allocation2 + $0x12c] sm:$0xf]  ;;  %v1017_v19 = vld [vmem:[#allocation2 + $0x140] sm:$0xf0]  ;;  %v1012_v21 = vor.u32 %v1281_v14, %v1009_v15  ;;  %v1016_v22 = vor.u32 %v1285_v17, %v1015_v16  ;;  %v983_v24 = vld [vmem:[#allocation2 + $0xf0] sm:$0xf] }
  0x12   :  { %v1020_v23 = vor.u32 %v1282_v18, %v1017_v19  ;;  %v1278_v25 = vld [vmem:[#allocation2 + $0x104] sm:$0xf0]  ;;  %v1275_v26 = vld [vmem:[#allocation2 + $0xf4] sm:$0xf]  ;;  %v985_v27 = vld [vmem:[#allocation2 + $0x108] sm:$0xf0] }
  0x13   :  { %v991_v28 = vld [vmem:[#allocation2 + $0xf8] sm:$0xf]  ;;  %v1279_v29 = vld [vmem:[#allocation2 + $0x10c] sm:$0xf0]  ;;  %v1276_v30 = vld [vmem:[#allocation2 + $0xfc] sm:$0xf]  ;;  %v984_v32 = vor.u32 %v1278_v25, %v983_v24  ;;  %v988_v33 = vor.u32 %v1275_v26, %v985_v27 }
  0x14   :  { %v993_v31 = vld [vmem:[#allocation2 + $0x110] sm:$0xf0]  ;;  %v992_v34 = vor.u32 %v1279_v29, %v991_v28  ;;  %v959_v36 = vld [vmem:[#allocation2 + $0xc0] sm:$0xf]  ;;  %v1272_v37 = vld [vmem:[#allocation2 + $0xd4] sm:$0xf0] }
  0x15   :  { %v996_v35 = vor.u32 %v1276_v30, %v993_v31  ;;  %v1269_v38 = vld [vmem:[#allocation2 + $0xc4] sm:$0xf]  ;;  %v961_v39 = vld [vmem:[#allocation2 + $0xd8] sm:$0xf0]  ;;  %v967_v40 = vld [vmem:[#allocation2 + $0xc8] sm:$0xf]  ;;  %v960_v44 = vor.u32 %v1272_v37, %v959_v36 }
  0x16   :  { %v1273_v41 = vld [vmem:[#allocation2 + $0xdc] sm:$0xf0]  ;;  %v1270_v42 = vld [vmem:[#allocation2 + $0xcc] sm:$0xf]  ;;  %v969_v43 = vld [vmem:[#allocation2 + $0xe0] sm:$0xf0]  ;;  %v964_v45 = vor.u32 %v1269_v38, %v961_v39 }
  0x17   :  { %643 = vmatpush.bf16.xpose.msra.mxu0 %v1008_v20  ;;  %v968_v46 = vor.u32 %v1273_v41, %v967_v40  ;;  %v972_v47 = vor.u32 %v1270_v42, %v969_v43  ;;  %v935_v48 = vld [vmem:[#allocation2 + $0x90] sm:$0xf]  ;;  %v1266_v49 = vld [vmem:[#allocation2 + $0xa4] sm:$0xf0]  ;;  %v1263_v50 = vld [vmem:[#allocation2 + $0x94] sm:$0xf] }
  0x18   :  { %656 = vmatpush.bf16.xpose.msra.mxu1 %v1012_v21  ;;  %v937_v51 = vld [vmem:[#allocation2 + $0xa8] sm:$0xf0]  ;;  %v943_v52 = vld [vmem:[#allocation2 + $0x98] sm:$0xf]  ;;  %v1267_v53 = vld [vmem:[#allocation2 + $0xac] sm:$0xf0]  ;;  %v936_v56 = vor.u32 %v1266_v49, %v935_v48 }
  0x19   :  { %669 = vmatpush.bf16.xpose.msra.mxu2 %v1016_v22  ;;  %682 = vmatpush.bf16.xpose.msra.mxu3 %v1020_v23  ;;  %v1264_v54 = vld [vmem:[#allocation2 + $0x9c] sm:$0xf]  ;;  %v945_v55 = vld [vmem:[#allocation2 + $0xb0] sm:$0xf0]  ;;  %v940_v57 = vor.u32 %v1263_v50, %v937_v51  ;;  %v944_v58 = vor.u32 %v1267_v53, %v943_v52  ;;  %v911_v60 = vld [vmem:[#allocation2 + $0x60] sm:$0xf] }
  0x1a   :  { %v948_v59 = vor.u32 %v1264_v54, %v945_v55  ;;  %v1260_v61 = vld [vmem:[#allocation2 + $0x74] sm:$0xf0]  ;;  %v1257_v62 = vld [vmem:[#allocation2 + $0x64] sm:$0xf]  ;;  %v913_v63 = vld [vmem:[#allocation2 + $0x78] sm:$0xf0] }
  0x1b   :  { %v919_v0 = vld [vmem:[#allocation2 + $0x68] sm:$0xf]  ;;  %v1261_v1 = vld [vmem:[#allocation2 + $0x7c] sm:$0xf0]  ;;  %v1258_v2 = vld [vmem:[#allocation2 + $0x6c] sm:$0xf]  ;;  %v912_v4 = vor.u32 %v1260_v61, %v911_v60  ;;  %v916_v5 = vor.u32 %v1257_v62, %v913_v63 }
  0x1c   :  { %v921_v3 = vld [vmem:[#allocation2 + $0x80] sm:$0xf0]  ;;  %v920_v6 = vor.u32 %v1261_v1, %v919_v0  ;;  %v887_v8 = vld [vmem:[#allocation2 + $0x30] sm:$0xf]  ;;  %v1254_v9 = vld [vmem:[#allocation2 + $0x44] sm:$0xf0] }
  0x1d   :  { %v924_v7 = vor.u32 %v1258_v2, %v921_v3  ;;  %v1251_v10 = vld [vmem:[#allocation2 + $0x34] sm:$0xf]  ;;  %v889_v11 = vld [vmem:[#allocation2 + $0x48] sm:$0xf0]  ;;  %v895_v12 = vld [vmem:[#allocation2 + $0x38] sm:$0xf]  ;;  %v888_v16 = vor.u32 %v1254_v9, %v887_v8 }
  0x1e   :  { %v1255_v13 = vld [vmem:[#allocation2 + $0x4c] sm:$0xf0]  ;;  %v1252_v14 = vld [vmem:[#allocation2 + $0x3c] sm:$0xf]  ;;  %v897_v15 = vld [vmem:[#allocation2 + $0x50] sm:$0xf0]  ;;  %v892_v17 = vor.u32 %v1251_v10, %v889_v11 }
  0x1f   :  { %644 = vmatpush.bf16.xpose.msra.mxu0 %v984_v32  ;;  %v896_v18 = vor.u32 %v1255_v13, %v895_v12  ;;  %v900_v19 = vor.u32 %v1252_v14, %v897_v15  ;;  %v863_v20 = vld [vmem:[#allocation2] sm:$0xf]  ;;  %v1248_v21 = vld [vmem:[#allocation2 + $0x14] sm:$0xf0]  ;;  %v1245_v22 = vld [vmem:[#allocation2 + $0x4] sm:$0xf] }
  0x20   :  { %657 = vmatpush.bf16.xpose.msra.mxu1 %v988_v33  ;;  %v865_v23 = vld [vmem:[#allocation2 + $0x18] sm:$0xf0]  ;;  %v871_v24 = vld [vmem:[#allocation2 + $0x8] sm:$0xf]  ;;  %v1249_v25 = vld [vmem:[#allocation2 + $0x1c] sm:$0xf0]  ;;  %v864_v31 = vor.u32 %v1248_v21, %v863_v20 }
  0x21   :  { %670 = vmatpush.bf16.xpose.msra.mxu2 %v992_v34  ;;  %683 = vmatpush.bf16.xpose.msra.mxu3 %v996_v35  ;;  %v1246_v26 = vld [vmem:[#allocation2 + $0xc] sm:$0xf]  ;;  %v873_v27 = vld [vmem:[#allocation2 + $0x20] sm:$0xf0]  ;;  %v1047_v28 = vld [vmem:[#allocation2 + $0x160] sm:$0xf]  ;;  %v868_v35 = vor.u32 %v1245_v22, %v865_v23  ;;  %v872_v36 = vor.u32 %v1249_v25, %v871_v24 }
  0x22   :  { %v1292_v29 = vld [vmem:[#allocation2 + $0x174] sm:$0xf0]  ;;  %v1289_v30 = vld [vmem:[#allocation2 + $0x164] sm:$0xf]  ;;  %v1049_v32 = vld [vmem:[#allocation2 + $0x178] sm:$0xf0]  ;;  %v876_v39 = vor.u32 %v1246_v26, %v873_v27 }
  0x23   :  { %v1223_v33 = vld [vmem:[#allocation2 + $0x2d0] sm:$0xf]  ;;  %v1338_v34 = vld [vmem:[#allocation2 + $0x2e4] sm:$0xf0]  ;;  %v1335_v37 = vld [vmem:[#allocation2 + $0x2d4] sm:$0xf]  ;;  %v1048_v40 = vor.u32 %v1292_v29, %v1047_v28  ;;  %v1052_v41 = vor.u32 %v1289_v30, %v1049_v32 }
  0x24   :  { %v1225_v38 = vld [vmem:[#allocation2 + $0x2e8] sm:$0xf0]  ;;  %v1224_v42 = vor.u32 %v1338_v34, %v1223_v33  ;;  %v1199_v48 = vld [vmem:[#allocation2 + $0x2a0] sm:$0xf]  ;;  %v1332_v49 = vld [vmem:[#allocation2 + $0x2b4] sm:$0xf0] }
  0x25   :  { %v1228_v43 = vor.u32 %v1335_v37, %v1225_v38  ;;  %v1329_v50 = vld [vmem:[#allocation2 + $0x2a4] sm:$0xf]  ;;  %v1201_v51 = vld [vmem:[#allocation2 + $0x2b8] sm:$0xf0]  ;;  %v1200_v54 = vor.u32 %v1332_v49, %v1199_v48  ;;  %v1175_v61 = vld [vmem:[#allocation2 + $0x270] sm:$0xf] }
  0x26   :  { %v1204_v55 = vor.u32 %v1329_v50, %v1201_v51  ;;  %v45_v60 = vld [vmem:[#allocation5] sm:$0x3f]  ;;  %v1326_v62 = vld [vmem:[#allocation2 + $0x284] sm:$0xf0]  ;;  %v1323_v63 = vld [vmem:[#allocation2 + $0x274] sm:$0xf] }
  0x27   :  { %645 = vmatpush.bf16.xpose.msra.mxu0 %v960_v44  ;;  %v1023_v44 = vld [vmem:[#allocation2 + $0x130] sm:$0xf]  ;;  %149 = vst [vmem:[#allocation1] ss:$9 sm:$0xff] %v45_v60  ;;  %v1177_v0 = vld [vmem:[#allocation2 + $0x288] sm:$0xf0]  ;;  %v1176_v3 = vor.u32 %v1326_v62, %v1175_v61 }
  0x28   :  { %658 = vmatpush.bf16.xpose.msra.mxu1 %v964_v45  ;;  %v1286_v45 = vld [vmem:[#allocation2 + $0x144] sm:$0xf0]  ;;  %v977_v8 = vld [vmem:[#allocation2 + $0xe8] sm:$0xf0]  ;;  %v1151_v9 = vld [vmem:[#allocation2 + $0x240] sm:$0xf] }
  0x29   :  { %671 = vmatpush.bf16.xpose.msra.mxu2 %v968_v46  ;;  %684 = vmatpush.bf16.xpose.msra.mxu3 %v972_v47  ;;  %v1283_v46 = vld [vmem:[#allocation2 + $0x134] sm:$0xf]  ;;  %v1025_v47 = vld [vmem:[#allocation2 + $0x148] sm:$0xf0]  ;;  %v1024_v52 = vor.u32 %v1286_v45, %v1023_v44  ;;  %v1320_v10 = vld [vmem:[#allocation2 + $0x254] sm:$0xf0] }
  0x2a   :  { %v1028_v53 = vor.u32 %v1283_v46, %v1025_v47  ;;  %v1317_v15 = vld [vmem:[#allocation2 + $0x244] sm:$0xf]  ;;  %v951_v21 = vld [vmem:[#allocation2 + $0xa0] sm:$0xf]  ;;  %v1268_v22 = vld [vmem:[#allocation2 + $0xb4] sm:$0xf0] }
  0x2b   :  { %v1265_v23 = vld [vmem:[#allocation2 + $0xa4] sm:$0xf]  ;;  %v953_v24 = vld [vmem:[#allocation2 + $0xb8] sm:$0xf0]  ;;  %v1127_v25 = vld [vmem:[#allocation2 + $0x210] sm:$0xf]  ;;  %v952_v29 = vor.u32 %v1268_v22, %v951_v21 }
  0x2c   :  { %v1314_v26 = vld [vmem:[#allocation2 + $0x224] sm:$0xf0]  ;;  %v1311_v27 = vld [vmem:[#allocation2 + $0x214] sm:$0xf]  ;;  %v1129_v28 = vld [vmem:[#allocation2 + $0x228] sm:$0xf0]  ;;  %v956_v30 = vor.u32 %v1265_v23, %v953_v24 }
  0x2d   :  { %v1132_v32 = vor.u32 %v1311_v27, %v1129_v28  ;;  %v1438_v33 = vmov 0   ;;  %v927_v34 = vld [vmem:[#allocation2 + $0x70] sm:$0xf]  ;;  %v929_v37 = vld [vmem:[#allocation2 + $0x88] sm:$0xf0]  ;;  %s850_s27 = sshll.u32 %s1505_s3, 4  ;;  %s851_s27 = int_to_ptr.hbm [resolvable:$true] %s850_s27 }
  0x2e   :  { %v1466_v11 = vld [vmem:[#allocation1] sm:$0xff]  ;;  %v1469_v12 = vld [vmem:[#allocation1 + $0x9] sm:$0xff]  ;;  %v1471_v13 = vld [vmem:[#allocation1 + $0x12] sm:$0xff]  ;;  %1347 = vset.pattern.permute.xlu0 %v1438_v33  ;;  %vm839_vm7 = vcmask 1041408  }
  0x2f   :  { %646 = vmatpush.bf16.xpose.msra.mxu0 %v936_v56  ;;  %v999_v56 = vld [vmem:[#allocation2 + $0x100] sm:$0xf]  ;;  %v1473_v14 = vld [vmem:[#allocation1 + $0x1b] sm:$0xff]  ;;  %v1253_v49 = vld [vmem:[#allocation2 + $0x44] sm:$0xf] }
  0x30   :  { %659 = vmatpush.bf16.xpose.msra.mxu1 %v940_v57  ;;  %v1280_v57 = vld [vmem:[#allocation2 + $0x114] sm:$0xf0]  ;;  %v1103_v38 = vld [vmem:[#allocation2 + $0x1e0] sm:$0xf]  ;;  %v905_v50 = vld [vmem:[#allocation2 + $0x58] sm:$0xf0] }
  0x31   :  { %672 = vmatpush.bf16.xpose.msra.mxu2 %v944_v58  ;;  %685 = vmatpush.bf16.xpose.msra.mxu3 %v948_v59  ;;  %v1277_v58 = vld [vmem:[#allocation2 + $0x104] sm:$0xf]  ;;  %v1001_v59 = vld [vmem:[#allocation2 + $0x118] sm:$0xf0]  ;;  %v1000_v1 = vor.u32 %v1280_v57, %v999_v56  ;;  %v903_v47 = vld [vmem:[#allocation2 + $0x40] sm:$0xf]  ;;  %v908_v56 = vor.u32 %v1253_v49, %v905_v50 }
  0x32   :  { %v1004_v2 = vor.u32 %v1277_v58, %v1001_v59  ;;  %v1256_v48 = vld [vmem:[#allocation2 + $0x54] sm:$0xf0]  ;;  %v1079_v51 = vld [vmem:[#allocation2 + $0x1b0] sm:$0xf]  ;;  %v1250_v60 = vld [vmem:[#allocation2 + $0x24] sm:$0xf0] }
  0x33   :  { %v879_v59 = vld [vmem:[#allocation2 + $0x10] sm:$0xf]  ;;  %v1247_v61 = vld [vmem:[#allocation2 + $0x14] sm:$0xf]  ;;  %v881_v62 = vld [vmem:[#allocation2 + $0x28] sm:$0xf0] }
  0x34   :  { %v1481_v23 = vld [vmem:[#allocation1 + $0x24] sm:$0xff]  ;;  %v1207_v24 = vld [vmem:[#allocation2 + $0x2a8] sm:$0xf]  ;;  %v1209_v27 = vld [vmem:[#allocation2 + $0x2c0] sm:$0xf0] }
  0x35   :  { %v1215_v28 = vld [vmem:[#allocation2 + $0x2b0] sm:$0xf]  ;;  %v1318_v49 = vld [vmem:[#allocation2 + $0x24c] sm:$0xf]  ;;  %v1161_v50 = vld [vmem:[#allocation2 + $0x260] sm:$0xf0] }
  0x37   :  { %647 = vmatpush.bf16.xpose.msra.mxu0 %v912_v4  ;;  %v1180_v4 = vor.u32 %v1323_v63, %v1177_v0  ;;  %v1055_v63 = vld [vmem:[#allocation2 + $0x180] sm:$0xf]  ;;  %v1296_v0 = vld [vmem:[#allocation2 + $0x194] sm:$0xf0] }
  0x38   :  { %660 = vmatpush.bf16.xpose.msra.mxu1 %v916_v5  ;;  %v975_v5 = vld [vmem:[#allocation2 + $0xd0] sm:$0xf] }
  0x39   :  { %673 = vmatpush.bf16.xpose.msra.mxu2 %v920_v6  ;;  %686 = vmatpush.bf16.xpose.msra.mxu3 %v924_v7  ;;  %v1274_v6 = vld [vmem:[#allocation2 + $0xe4] sm:$0xf0]  ;;  %v1271_v7 = vld [vmem:[#allocation2 + $0xd4] sm:$0xf] }
  0x3f   :  { %648 = vmatpush.bf16.xpose.msra.mxu0 %v888_v16  ;;  %v1153_v16 = vld [vmem:[#allocation2 + $0x258] sm:$0xf0] }
  0x40   :  { %661 = vmatpush.bf16.xpose.msra.mxu1 %v892_v17  ;;  %v976_v17 = vor.u32 %v1274_v6, %v975_v5  ;;  %v1156_v20 = vor.u32 %v1317_v15, %v1153_v16  ;;  %v1336_v5 = vld [vmem:[#allocation2 + $0x2dc] sm:$0xf]  ;;  %v880_v6 = vor.u32 %v1250_v60, %v879_v59  ;;  %v1056_v15 = vor.u32 %v1296_v0, %v1055_v63  ;;  %v1337_v16 = vld [vmem:[#allocation2 + $0x2e4] sm:$0xf]  ;;  %v1135_v59 = vld [vmem:[#allocation2 + $0x218] sm:$0xf] }
  0x41   :  { %674 = vmatpush.bf16.xpose.msra.mxu2 %v896_v18  ;;  %687 = vmatpush.bf16.xpose.msra.mxu3 %v900_v19  ;;  %v980_v18 = vor.u32 %v1271_v7, %v977_v8  ;;  %v1152_v19 = vor.u32 %v1320_v10, %v1151_v9  ;;  %v1233_v7 = vld [vmem:[#allocation2 + $0x2f0] sm:$0xf0]  ;;  %v1239_v8 = vld [vmem:[#allocation2 + $0x2e0] sm:$0xf]  ;;  %v1340_v9 = vld [vmem:[#allocation2 + $0x2f4] sm:$0xf0]  ;;  %v884_v10 = vor.u32 %v1247_v61, %v881_v62 }
  0x42   :  { %v1240_v21 = vor.u32 %v1340_v9, %v1239_v8  ;;  %v1315_v60 = vld [vmem:[#allocation2 + $0x22c] sm:$0xf0]  ;;  %v1312_v61 = vld [vmem:[#allocation2 + $0x21c] sm:$0xf]  ;;  %v1137_v62 = vld [vmem:[#allocation2 + $0x230] sm:$0xf0] }
  0x43   :  { %v1143_v63 = vld [vmem:[#allocation2 + $0x220] sm:$0xf]  ;;  %v1316_v0 = vld [vmem:[#allocation2 + $0x234] sm:$0xf0]  ;;  %v1306_v9 = vld [vmem:[#allocation2 + $0x1ec] sm:$0xf] }
  0x44   :  { %v1309_v8 = vld [vmem:[#allocation2 + $0x1fc] sm:$0xf0] }
  0x47   :  { %649 = vmatpush.bf16.xpose.msra.mxu0 %v864_v31  ;;  %v1128_v31 = vor.u32 %v1314_v26, %v1127_v25  ;;  %v1333_v25 = vld [vmem:[#allocation2 + $0x2bc] sm:$0xf0]  ;;  %v1330_v26 = vld [vmem:[#allocation2 + $0x2ac] sm:$0xf] }
  0x48   :  { %662 = vmatpush.bf16.xpose.msra.mxu1 %v868_v35  ;;  %v1262_v35 = vld [vmem:[#allocation2 + $0x84] sm:$0xf0]  ;;  %v1208_v33 = vor.u32 %v1333_v25, %v1207_v24  ;;  %v1087_v24 = vld [vmem:[#allocation2 + $0x1b8] sm:$0xf]  ;;  %v1303_v25 = vld [vmem:[#allocation2 + $0x1cc] sm:$0xf0] }
  0x49   :  { %675 = vmatpush.bf16.xpose.msra.mxu2 %v872_v36  ;;  %688 = vmatpush.bf16.xpose.msra.mxu3 %v876_v39  ;;  %v1259_v36 = vld [vmem:[#allocation2 + $0x74] sm:$0xf]  ;;  %v1308_v39 = vld [vmem:[#allocation2 + $0x1f4] sm:$0xf0] }
  0x4a   :  { %v932_v44 = vor.u32 %v1259_v36, %v929_v37  ;;  %v1104_v45 = vor.u32 %v1308_v39, %v1103_v38  ;;  %v1183_v37 = vld [vmem:[#allocation2 + $0x278] sm:$0xf]  ;;  %v1327_v38 = vld [vmem:[#allocation2 + $0x28c] sm:$0xf0]  ;;  %v1324_v39 = vld [vmem:[#allocation2 + $0x27c] sm:$0xf] }
  0x4e   :  { %650 = vmatmul.bf16.vlgmr.msra.gmra.mxu0 %v1466_v11 }
  0x4f   :  { %694 = vmatpush.bf16.xpose.msrb.mxu0 %v1048_v40  ;;  %663 = vmatmul.bf16.vlgmr.msra.gmra.mxu1 %v1469_v12  ;;  %v1305_v40 = vld [vmem:[#allocation2 + $0x1e4] sm:$0xf] }
  0x50   :  { %707 = vmatpush.bf16.xpose.msrb.mxu1 %v1052_v41  ;;  %676 = vmatmul.bf16.vlgmr.msra.gmra.mxu2 %v1471_v13  ;;  %v1105_v41 = vld [vmem:[#allocation2 + $0x1f8] sm:$0xf0] }
  0x51   :  { %720 = vmatpush.bf16.xpose.msrb.mxu2 %v1224_v42  ;;  %733 = vmatpush.bf16.xpose.msrb.mxu3 %v1228_v43  ;;  %v928_v42 = vor.u32 %v1262_v35, %v927_v34  ;;  %v142_v43 = vld [vmem:[%s1504_s2] sm:$0x3]  ;;  %v1108_v46 = vor.u32 %v1305_v40, %v1105_v41  ;;  %v1212_v34 = vor.u32 %v1330_v26, %v1209_v27  ;;  %v1185_v40 = vld [vmem:[#allocation2 + $0x290] sm:$0xf0]  ;;  %v1191_v41 = vld [vmem:[#allocation2 + $0x280] sm:$0xf] }
  0x52   :  { %689 = vmatmul.bf16.vlgmr.msra.gmra.mxu3 %v1473_v14  ;;  %145 = vperm.xlu0 %1347, %v142_v43   ;;  %v1325_v43 = vld [vmem:[#allocation2 + $0x284] sm:$0xf]  ;;  %v1300_v26 = vld [vmem:[#allocation2 + $0x1bc] sm:$0xf]  ;;  %v1089_v27 = vld [vmem:[#allocation2 + $0x1d0] sm:$0xf0] }
  0x53   :  { %s1439_s2 = smov [#allocation7]  }
  0x54   :  { %s848_s24 = sshll.u32 %s1439_s2, 4  ;;  %s849_s24 = int_to_ptr.vmem [resolvable:$true] %s848_s24 }
  0x57   :  { %695 = vmatpush.bf16.xpose.msrb.mxu0 %v1024_v52  ;;  %v1302_v52 = vld [vmem:[#allocation2 + $0x1c4] sm:$0xf0] }
  0x58   :  { %708 = vmatpush.bf16.xpose.msrb.mxu1 %v1028_v53  ;;  %v1299_v53 = vld [vmem:[#allocation2 + $0x1b4] sm:$0xf]  ;;  %v1080_v57 = vor.u32 %v1302_v52, %v1079_v51  ;;  %v1167_v51 = vld [vmem:[#allocation2 + $0x250] sm:$0xf]  ;;  %v1322_v52 = vld [vmem:[#allocation2 + $0x264] sm:$0xf0] }
  0x59   :  { %721 = vmatpush.bf16.xpose.msrb.mxu2 %v1200_v54  ;;  %734 = vmatpush.bf16.xpose.msrb.mxu3 %v1204_v55  ;;  %v1081_v54 = vld [vmem:[#allocation2 + $0x1c8] sm:$0xf0]  ;;  %v904_v55 = vor.u32 %v1256_v48, %v903_v47 }
  0x5a   :  { %v1084_v58 = vor.u32 %v1299_v53, %v1081_v54  ;;  %v1319_v53 = vld [vmem:[#allocation2 + $0x254] sm:$0xf]  ;;  %v1169_v54 = vld [vmem:[#allocation2 + $0x268] sm:$0xf0] }
  0x5f   :  { %696 = vmatpush.bf16.xpose.msrb.mxu0 %v1000_v1  ;;  %v1293_v1 = vld [vmem:[#allocation2 + $0x184] sm:$0xf] }
  0x60   :  { %709 = vmatpush.bf16.xpose.msrb.mxu1 %v1004_v2  ;;  %v1057_v2 = vld [vmem:[#allocation2 + $0x198] sm:$0xf0] }
  0x61   :  { %722 = vmatpush.bf16.xpose.msrb.mxu2 %v1176_v3  ;;  %735 = vmatpush.bf16.xpose.msrb.mxu3 %v1180_v4  ;;  %v1231_v3 = vld [vmem:[#allocation2 + $0x2d8] sm:$0xf]  ;;  %v1339_v4 = vld [vmem:[#allocation2 + $0x2ec] sm:$0xf0] }
  0x67   :  { %697 = vmatpush.bf16.xpose.msrb.mxu0 %v976_v17  ;;  %v1241_v17 = vld [vmem:[#allocation2 + $0x2f8] sm:$0xf0] }
  0x68   :  { %710 = vmatpush.bf16.xpose.msrb.mxu1 %v980_v18  ;;  %v1060_v18 = vor.u32 %v1293_v1, %v1057_v2  ;;  %v1244_v22 = vor.u32 %v1337_v16, %v1241_v17  ;;  %v1313_v1 = vld [vmem:[#allocation2 + $0x224] sm:$0xf]  ;;  %v1145_v2 = vld [vmem:[#allocation2 + $0x238] sm:$0xf0]  ;;  %v1310_v16 = vld [vmem:[#allocation2 + $0x204] sm:$0xf0] }
  0x69   :  { %723 = vmatpush.bf16.xpose.msrb.mxu2 %v1152_v19  ;;  %736 = vmatpush.bf16.xpose.msrb.mxu3 %v1156_v20  ;;  %v1232_v19 = vor.u32 %v1339_v4, %v1231_v3  ;;  %v1236_v20 = vor.u32 %v1336_v5, %v1233_v7  ;;  %v1136_v3 = vor.u32 %v1315_v60, %v1135_v59  ;;  %v1111_v7 = vld [vmem:[#allocation2 + $0x1e8] sm:$0xf]  ;;  %v1307_v17 = vld [vmem:[#allocation2 + $0x1f4] sm:$0xf] }
  0x6a   :  { %v1140_v4 = vor.u32 %v1312_v61, %v1137_v62  ;;  %v1144_v5 = vor.u32 %v1316_v0, %v1143_v63 }
  0x6f   :  { %698 = vmatpush.bf16.xpose.msrb.mxu0 %v952_v29  ;;  %v1334_v29 = vld [vmem:[#allocation2 + $0x2c4] sm:$0xf0] }
  0x70   :  { %711 = vmatpush.bf16.xpose.msrb.mxu1 %v956_v30  ;;  %v1483_v30 = vld [vmem:[#allocation1 + $0x2d] sm:$0xff]  ;;  %v1216_v35 = vor.u32 %v1334_v29, %v1215_v28  ;;  %v1095_v28 = vld [vmem:[#allocation2 + $0x1c0] sm:$0xf]  ;;  %v1304_v29 = vld [vmem:[#allocation2 + $0x1d4] sm:$0xf0] }
  0x71   :  { %724 = vmatpush.bf16.xpose.msrb.mxu2 %v1128_v31  ;;  %737 = vmatpush.bf16.xpose.msrb.mxu3 %v1132_v32  ;;  %v1331_v31 = vld [vmem:[#allocation2 + $0x2b4] sm:$0xf]  ;;  %v1217_v32 = vld [vmem:[#allocation2 + $0x2c8] sm:$0xf0] }
  0x72   :  { %v1220_v36 = vor.u32 %v1331_v31, %v1217_v32  ;;  %v1301_v31 = vld [vmem:[#allocation2 + $0x1c4] sm:$0xf]  ;;  %v1097_v32 = vld [vmem:[#allocation2 + $0x1d8] sm:$0xf0] }
  0x77   :  { %699 = vmatpush.bf16.xpose.msrb.mxu0 %v928_v42  ;;  %v1328_v42 = vld [vmem:[#allocation2 + $0x294] sm:$0xf0] }
  0x78   :  { %712 = vmatpush.bf16.xpose.msrb.mxu1 %v932_v44  ;;  %v1193_v44 = vld [vmem:[#allocation2 + $0x298] sm:$0xf0]  ;;  %v1192_v47 = vor.u32 %v1328_v42, %v1191_v41  ;;  %v1071_v41 = vld [vmem:[#allocation2 + $0x190] sm:$0xf]  ;;  %v1298_v42 = vld [vmem:[#allocation2 + $0x1a4] sm:$0xf0] }
  0x79   :  { %725 = vmatpush.bf16.xpose.msrb.mxu2 %v1104_v45  ;;  %738 = vmatpush.bf16.xpose.msrb.mxu3 %v1108_v46  ;;  %v1184_v45 = vor.u32 %v1327_v38, %v1183_v37  ;;  %v1188_v46 = vor.u32 %v1324_v39, %v1185_v40  ;;  %v1196_v48 = vor.u32 %v1325_v43, %v1193_v44  ;;  %v1063_v37 = vld [vmem:[#allocation2 + $0x188] sm:$0xf]  ;;  %v1297_v38 = vld [vmem:[#allocation2 + $0x19c] sm:$0xf0]  ;;  %v1294_v39 = vld [vmem:[#allocation2 + $0x18c] sm:$0xf] }
  0x7a   :  { %v1065_v40 = vld [vmem:[#allocation2 + $0x1a0] sm:$0xf0]  ;;  %v1295_v43 = vld [vmem:[#allocation2 + $0x194] sm:$0xf]  ;;  %v1073_v44 = vld [vmem:[#allocation2 + $0x1a8] sm:$0xf0] }
  0x7f   :  { %700 = vmatpush.bf16.xpose.msrb.mxu0 %v904_v55 }
  0x80   :  { %713 = vmatpush.bf16.xpose.msrb.mxu1 %v908_v56  ;;  %v1164_v56 = vor.u32 %v1318_v49, %v1161_v50 }
  0x81   :  { %726 = vmatpush.bf16.xpose.msrb.mxu2 %v1080_v57  ;;  %739 = vmatpush.bf16.xpose.msrb.mxu3 %v1084_v58  ;;  %v1168_v57 = vor.u32 %v1322_v52, %v1167_v51  ;;  %v1172_v58 = vor.u32 %v1319_v53, %v1169_v54 }
  0x87   :  { %701 = vmatpush.bf16.xpose.msrb.mxu0 %v880_v6  ;;  %v1148_v6 = vor.u32 %v1313_v1, %v1145_v2 }
  0x88   :  { %714 = vmatpush.bf16.xpose.msrb.mxu1 %v884_v10  ;;  %v1113_v10 = vld [vmem:[#allocation2 + $0x200] sm:$0xf0] }
  0x89   :  { %727 = vmatpush.bf16.xpose.msrb.mxu2 %v1056_v15  ;;  %740 = vmatpush.bf16.xpose.msrb.mxu3 %v1060_v18  ;;  %v1119_v15 = vld [vmem:[#allocation2 + $0x1f0] sm:$0xf]  ;;  %v1121_v18 = vld [vmem:[#allocation2 + $0x208] sm:$0xf0] }
  0x8e   :  { %702 = vmatmul.bf16.vlgmr.msrb.gmra.mxu0 %v1481_v23 }
  0x8f   :  { %746 = vmatpush.bf16.xpose.msra.mxu0 %v1232_v19  ;;  %715 = vmatmul.bf16.vlgmr.msrb.gmra.mxu1 %v1483_v30  ;;  %v1112_v19 = vor.u32 %v1309_v8, %v1111_v7 }
  0x90   :  { %759 = vmatpush.bf16.xpose.msra.mxu1 %v1236_v20  ;;  %728 = vmatmul.bf16.vlgmr.msrb.gmra.mxu2 %v1466_v11  ;;  %v1159_v11 = vld [vmem:[#allocation2 + $0x248] sm:$0xf]  ;;  %v1116_v20 = vor.u32 %v1306_v9, %v1113_v10 }
  0x91   :  { %772 = vmatpush.bf16.xpose.msra.mxu2 %v1240_v21  ;;  %785 = vmatpush.bf16.xpose.msra.mxu3 %v1244_v22  ;;  %v1120_v21 = vor.u32 %v1310_v16, %v1119_v15  ;;  %v1124_v22 = vor.u32 %v1307_v17, %v1121_v18 }
  0x92   :  { %741 = vmatmul.bf16.vlgmr.msrb.gmra.mxu3 %v1469_v12  ;;  %v1321_v12 = vld [vmem:[#allocation2 + $0x25c] sm:$0xf0] }
  0x93   :  { %v1160_v55 = vor.u32 %v1321_v12, %v1159_v11 }
  0x97   :  { %747 = vmatpush.bf16.xpose.msra.mxu0 %v1208_v33  ;;  %v1088_v33 = vor.u32 %v1303_v25, %v1087_v24 }
  0x98   :  { %760 = vmatpush.bf16.xpose.msra.mxu1 %v1212_v34  ;;  %v1092_v34 = vor.u32 %v1300_v26, %v1089_v27 }
  0x99   :  { %773 = vmatpush.bf16.xpose.msra.mxu2 %v1216_v35  ;;  %786 = vmatpush.bf16.xpose.msra.mxu3 %v1220_v36  ;;  %v1096_v35 = vor.u32 %v1304_v29, %v1095_v28  ;;  %v1100_v36 = vor.u32 %v1301_v31, %v1097_v32 }
  0x9f   :  { %748 = vmatpush.bf16.xpose.msra.mxu0 %v1184_v45  ;;  %v1064_v45 = vor.u32 %v1297_v38, %v1063_v37 }
  0xa0   :  { %761 = vmatpush.bf16.xpose.msra.mxu1 %v1188_v46  ;;  %v1068_v46 = vor.u32 %v1294_v39, %v1065_v40 }
  0xa1   :  { %774 = vmatpush.bf16.xpose.msra.mxu2 %v1192_v47  ;;  %787 = vmatpush.bf16.xpose.msra.mxu3 %v1196_v48  ;;  %v1072_v47 = vor.u32 %v1298_v42, %v1071_v41  ;;  %v1076_v48 = vor.u32 %v1295_v43, %v1073_v44 }
  0xa7   :  { %749 = vmatpush.bf16.xpose.msra.mxu0 %v1160_v55 }
  0xa8   :  { %762 = vmatpush.bf16.xpose.msra.mxu1 %v1164_v56 }
  0xa9   :  { %775 = vmatpush.bf16.xpose.msra.mxu2 %v1168_v57  ;;  %788 = vmatpush.bf16.xpose.msra.mxu3 %v1172_v58 }
  0xaf   :  { %750 = vmatpush.bf16.xpose.msra.mxu0 %v1136_v3 }
  0xb0   :  { %763 = vmatpush.bf16.xpose.msra.mxu1 %v1140_v4 }
  0xb1   :  { %776 = vmatpush.bf16.xpose.msra.mxu2 %v1144_v5  ;;  %789 = vmatpush.bf16.xpose.msra.mxu3 %v1148_v6 }
  0xb7   :  { %751 = vmatpush.bf16.xpose.msra.mxu0 %v1112_v19 }
  0xb8   :  { %764 = vmatpush.bf16.xpose.msra.mxu1 %v1116_v20 }
  0xb9   :  { %777 = vmatpush.bf16.xpose.msra.mxu2 %v1120_v21  ;;  %790 = vmatpush.bf16.xpose.msra.mxu3 %v1124_v22 }
  0xbf   :  { %752 = vmatpush.bf16.xpose.msra.mxu0 %v1088_v33 }
  0xc0   :  { %765 = vmatpush.bf16.xpose.msra.mxu1 %v1092_v34 }
  0xc1   :  { %778 = vmatpush.bf16.xpose.msra.mxu2 %v1096_v35  ;;  %791 = vmatpush.bf16.xpose.msra.mxu3 %v1100_v36 }
  0xc4   :  { %v146_v50 = vpop.permute.xlu0 %145 }
  0xc7   :  { %753 = vmatpush.bf16.xpose.msra.mxu0 %v1064_v45 }
  0xc8   :  { %766 = vmatpush.bf16.xpose.msra.mxu1 %v1068_v46 }
  0xc9   :  { %779 = vmatpush.bf16.xpose.msra.mxu2 %v1072_v47  ;;  %792 = vmatpush.bf16.xpose.msra.mxu3 %v1076_v48 }
  0xcb   :  { %v651_v11 = vpop.f32.mrf.mxu0 }
  0xcc   :  { %v664_v12 = vpop.f32.mrf.mxu1  ;;  %v652_v52 = vadd.f32 %v651_v11, %v146_v50 }
  0xce   :  { %754 = vmatmul.bf16.vlgmr.msra.gmra.mxu0 %v1471_v13  ;;  %v665_v55 = vadd.f32 %v664_v12, %v652_v52 }
  0xcf   :  { %767 = vmatmul.bf16.vlgmr.msra.gmra.mxu1 %v1473_v14 }
  0xd0   :  { %780 = vmatmul.bf16.vlgmr.msra.gmra.mxu2 %v1481_v23  ;;  %793 = vmatmul.bf16.vlgmr.msra.gmra.mxu3 %v1483_v30 }
  0xd3   :  { %v677_v49 = vpop.f32.mrf.mxu2  ;;  %v653_v51 = vpop.f32.mrf.mxu0 }
  0xd4   :  { %v666_v53 = vpop.f32.mrf.mxu1  ;;  %v678_v56 = vadd.f32 %v677_v49, %v665_v55 }
  0xd5   :  { %v690_v54 = vpop.f32.mrf.mxu3 }
  0xd6   :  { %v691_v57 = vadd.f32 %v690_v54, %v678_v56 }
  0xdb   :  { %v679_v58 = vpop.f32.mrf.mxu2 }
  0xdd   :  { %v692_v59 = vpop.f32.mrf.mxu3 }
 0x10b   :  { %v703_v13 = vpop.f32.mrf.mxu0 }
 0x10c   :  { %v704_v60 = vadd.f32 %v703_v13, %v691_v57  ;;  %v716_v14 = vpop.f32.mrf.mxu1 }
 0x10e   :  { %v717_v61 = vadd.f32 %v716_v14, %v704_v60 }
 0x110   :  { %v798_v2 = vsub.f32 0.0, %v717_v61 }
 0x112   :  { %v800_v4 = vmul.f32 1.442695, %v798_v2 }
 0x113   :  { %v729_v23 = vpop.f32.mrf.mxu2  ;;  %v705_v30 = vpop.f32.mrf.mxu0 }
 0x114   :  { %v718_v63 = vpop.f32.mrf.mxu1  ;;  %v730_v3 = vadd.f32 %v729_v23, %v146_v50  ;;  %1348 = vpow2.f32 %v800_v4 }
 0x115   :  { %v742_v62 = vpop.f32.mrf.mxu3 }
 0x116   :  { %v743_v5 = vadd.f32 %v742_v62, %v730_v3 }
 0x11a   :  { %v1349_v15 = vpop.eup %1348 }
 0x11b   :  { %v731_v0 = vpop.f32.mrf.mxu2  ;;  %v804_v21 = vadd.f32 1.0, %v1349_v15 }
 0x11d   :  { %v744_v1 = vpop.f32.mrf.mxu3  ;;  %1350 = vrcp.f32 %v804_v21  ;;  %vm811_vm2 = vweird.f32 %v804_v21  ;;  %v817_v41 = vand.u32 2147483648, %v804_v21  ;;  %v815_v43 = vand.u32 2147483647, %v804_v21 }
 0x11f   :  { %v818_v48 = vor.u32 1.1754944e-38, %v817_v41  ;;  %vm816_vm8 = vcmp.eq.f32.partialorder %v815_v43, 8.507059e+37 }
 0x123   :  { %v1351_v27 = vpop.eup %1350 }
 0x124   :  { %v807_v31 = vmul.f32 %v1351_v27, %v804_v21  ;;  %vm812_vm0 = vweird.f32 %v1351_v27 }
 0x125   :  { %vm1493_vm3 = vmor %vm811_vm2, %vm812_vm0 }
 0x126   :  { %v808_v32 = vsub.f32 1.0, %v807_v31 }
 0x128   :  { %v809_v35 = vmul.f32 %v1351_v27, %v808_v32 }
 0x12a   :  { %v810_v38 = vadd.f32 %v1351_v27, %v809_v35 }
 0x12c   :  { %v814_v46 = vsel %vm1493_vm3, %v1351_v27, %v810_v38 }
 0x12d   :  { %v819_v49 = vsel %vm816_vm8, %v818_v48, %v814_v46 }
 0x14b   :  { %v755_v6 = vpop.f32.mrf.mxu0 }
 0x14c   :  { %v768_v7 = vpop.f32.mrf.mxu1  ;;  %v756_v8 = vadd.f32 %v755_v6, %v743_v5 }
 0x14e   :  { %v769_v9 = vadd.f32 %v768_v7, %v756_v8 }
 0x153   :  { %v781_v10 = vpop.f32.mrf.mxu2  ;;  %v794_v17 = vpop.f32.mrf.mxu3 }
 0x154   :  { %v782_v16 = vadd.f32 %v781_v10, %v769_v9  ;;  %v757_v18 = vpop.f32.mrf.mxu0  ;;  %v770_v19 = vpop.f32.mrf.mxu1 }
 0x156   :  { %v795_v20 = vadd.f32 %v794_v17, %v782_v16 }
 0x158   :  { %v799_v22 = vsub.f32 0.0, %v795_v20 }
 0x15a   :  { %v802_v24 = vmul.f32 1.442695, %v799_v22 }
 0x15b   :  { %v783_v25 = vpop.f32.mrf.mxu2  ;;  %v796_v26 = vpop.f32.mrf.mxu3 }
 0x15c   :  { %1352 = vpow2.f32 %v802_v24 }
 0x162   :  { %v1353_v28 = vpop.eup %1352 }
 0x163   :  { %v805_v29 = vadd.f32 1.0, %v1353_v28 }
 0x165   :  { %1354 = vrcp.f32 %v805_v29  ;;  %v832_v37 = vand.u32 2147483648, %v805_v29  ;;  %v830_v40 = vand.u32 2147483647, %v805_v29  ;;  %vm826_vm4 = vweird.f32 %v805_v29 }
 0x167   :  { %v833_v45 = vor.u32 1.1754944e-38, %v832_v37  ;;  %vm831_vm6 = vcmp.eq.f32.partialorder %v830_v40, 8.507059e+37 }
 0x16b   :  { %v1355_v33 = vpop.eup %1354 }
 0x16c   :  { %v822_v34 = vmul.f32 %v1355_v33, %v805_v29  ;;  %vm827_vm1 = vweird.f32 %v1355_v33 }
 0x16d   :  { %vm828_vm5 = vmor %vm826_vm4, %vm827_vm1 }
 0x16e   :  { %v823_v36 = vsub.f32 1.0, %v822_v34 }
 0x170   :  { %v824_v39 = vmul.f32 %v1355_v33, %v823_v36 }
 0x172   :  { %v825_v44 = vadd.f32 %v1355_v33, %v824_v39 }
 0x174   :  { %v829_v47 = vsel %vm828_vm5, %v1355_v33, %v825_v44 }
 0x175   :  { %v834_v11 = vsel %vm831_vm6, %v833_v45, %v829_v47 }
 0x176   :  { %v838_v12 = vrot.slane %v834_v11, 6 }
 0x178   :  { %v840_v50 = vsel %vm839_vm7, %v819_v49, %v838_v12 }
 0x179   :  { %842 = vst [vmem:[#allocation7] sm:$0xf] %v840_v50 }
 0x17a   :  { %853 = dma.vmem_to_hbm [thread:$0]  %s849_s24, 64, %s851_s27, [#allocation4]  }
 0x17b   :  { %1432 = dma.done.wait [#allocation4], 64  }
 0x17c   :  { %1433 = vsyncadd [#allocation4], 4294967232 }
 0x17d   :  { %858 = vsyncpa [#allocation3], 1 }
 0x17e   :  { %859 = vsyncpa [#allocation6], 1 }
 0x17f   :  { %860 = vsyncpa [#allocation4], 1 }

</bundles_post_ra>
